<compile_context>
chip_gen: v6e
topology: v6e:2x2x1
jax: 0.10.0
libtpu: 0.0.40
codegen_flags: <defaults>
</compile_context>

<pallas_src>
import functools
import math

import jax
import jax.numpy as jnp
from jax.experimental import pallas as pl
from jax.experimental.pallas import tpu as pltpu


def _cdiv(a, b):
    return -(-a // b)


def _round_up(a, b):
    return _cdiv(a, b) * b


def _tta_kernel(t_ref, seldiv_ref, phase_ref, out_ref, *, use_mxu):
    # t_ref:      (tile_rows, fold)  folded time-to-arrival values
    # seldiv_ref: (fold, W)          block-diagonal selector * pairwise div_term
    # phase_ref:  (1, W)             tile([0, pi/2], dim//2) repeated fold times
    # out_ref:    (tile_rows, W)     W = fold * dim (multiple of 128 when folded)
    if use_mxu:
        # Row -> lane expansion as a single MXU matmul.  Off-diagonal seldiv
        # entries are exact 0.0, so each output element is one product.
        angle = jnp.dot(t_ref[...], seldiv_ref[...],
                        preferred_element_type=jnp.float32,
                        precision=jax.lax.Precision.HIGHEST)
    else:
        angle = t_ref[...] * seldiv_ref[...]          # (R, 1) * (1, W) broadcast
    # cos(x) == sin(x + pi/2): a single EUP sin covers both interleaved halves.
    # TODO(synk): if |tta * div_term| can exceed ~1e3, range-reduce before the
    # +pi/2 add (f32 rounding of the phase) to keep parity with torch.cos.
    out_ref[...] = jnp.sin(angle + phase_ref[...]).astype(out_ref.dtype)


def _time_to_arrival_pallas(tta, div_term, *, tile_rows=None,
                            out_dtype=jnp.float32,
                            vmem_budget_bytes=24 << 20):
    n = tta.shape[0]
    half = div_term.shape[0]
    dim = 2 * half

    tta = tta.astype(jnp.float32)
    div_pair = jnp.repeat(div_term.astype(jnp.float32), 2)                # (dim,)
    phase = jnp.tile(jnp.array([0.0, jnp.pi / 2.0], jnp.float32), half)   # (dim,)

    # Lane-density fold: W = fold*dim is a multiple of 128 and fold a multiple
    # of 8 (aligned MXU contraction).  Skip when dim is already lane-dense or
    # when the folded row would become unreasonably wide.
    if dim % 128 == 0:
        fold = 1
    else:
        fold_unit = 128 // math.gcd(dim, 128)
        fold = fold_unit * max(1, 8 // fold_unit)
        if fold * dim > 2048:
            fold = 1
    w = fold * dim

    if fold > 1:
        # seldiv[r, q*dim + j] = div_pair[j] if q == r else 0.0  (exact zeros)
        eye = jnp.eye(fold, dtype=jnp.float32)
        seldiv = (eye[:, :, None] * div_pair[None, None, :]).reshape(fold, w)
    else:
        seldiv = div_pair.reshape(1, dim)
    phase_w = jnp.tile(phase, fold).reshape(1, w)

    out_size = jnp.dtype(out_dtype).itemsize
    # VMEM bytes per row per buffer: lane-dense output + lane-padded input.
    bytes_per_row = w * out_size + _round_up(fold, 128) * 4

    rows = _cdiv(n, fold)
    row_align = 16 if out_size < 4 else 8        # bf16 sublane packing
    if tile_rows is None:
        budget_rows = vmem_budget_bytes // (2 * bytes_per_row)   # double-buffer
        budget_rows = max(16, min(budget_rows - budget_rows % 16, 32768))
        if rows <= 64:
            tile_rows = min(budget_rows, _round_up(rows, row_align))
        elif rows <= 2 * budget_rows:
            # At least 2 grid steps so both v7x TensorCores get work.
            tile_rows = _round_up(_cdiv(rows, 2), 16)
        else:
            tile_rows = budget_rows
    else:
        tile_rows = _round_up(max(tile_rows, row_align), row_align)

    rows_pad = _round_up(rows, tile_rows)
    n_pad = rows_pad * fold
    if n_pad != n:
        tta = jnp.pad(tta, (0, n_pad - n))
    t_folded = tta.reshape(rows_pad, fold)

    grid_steps = rows_pad // tile_rows
    cost = pl.CostEstimate(
        flops=2 * rows_pad * w * fold,
        transcendentals=rows_pad * w,
        bytes_accessed=(rows_pad * fold * 4
                        + grid_steps * (fold + 1) * w * 4
                        + rows_pad * w * out_size),
    )
    vmem_limit = int(min(30 << 20,
                         max(4 << 20, 2 * bytes_per_row * tile_rows + (2 << 20))))

    out = pl.pallas_call(
        functools.partial(_tta_kernel, use_mxu=(fold > 1)),
        out_shape=jax.ShapeDtypeStruct((rows_pad, w), out_dtype),
        grid=(grid_steps,),
        in_specs=[
            pl.BlockSpec((tile_rows, fold), lambda i: (i, 0)),
            pl.BlockSpec((fold, w), lambda i: (0, 0)),
            pl.BlockSpec((1, w), lambda i: (0, 0)),
        ],
        out_specs=pl.BlockSpec((tile_rows, w), lambda i: (i, 0)),
        compiler_params=pltpu.CompilerParams(
            dimension_semantics=("parallel",),
            vmem_limit_bytes=vmem_limit),
        cost_estimate=cost,
    )(t_folded, seldiv, phase_w)

    # Free un-fold: (rows_pad, fold*dim) row-major == (rows_pad*fold, dim).
    emb = out.reshape(n_pad, dim)
    return emb if n_pad == n else emb[:n]


def time_to_arrival_reference(tta, div_term):
    # Pure-JAX reference matching the PyTorch forward exactly.
    n = tta.shape[0]
    dim = 2 * div_term.shape[0]
    ang = tta.astype(jnp.float32)[:, None] * div_term.astype(jnp.float32)[None, :]
    emb = jnp.zeros((n, dim), jnp.float32)
    emb = emb.at[:, 0::2].set(jnp.sin(ang))
    emb = emb.at[:, 1::2].set(jnp.cos(ang))
    return emb


_PALLAS_MIN_ELEMS = 1 << 15   # below this, kernel-launch overhead dominates


def time_to_arrival(tta, div_term, *, force_pallas=False, tile_rows=None,
                    out_dtype=jnp.float32):
    """tta: (N,) float32, div_term: (dim//2,) float32 -> (N, dim)."""
    n = tta.shape[0]
    dim = 2 * div_term.shape[0]
    if not force_pallas and n * dim < _PALLAS_MIN_ELEMS:
        return time_to_arrival_reference(tta, div_term).astype(out_dtype)
    return _time_to_arrival_pallas(tta, div_term, tile_rows=tile_rows,
                                   out_dtype=out_dtype)


def _make_div_term(dim):
    # Deterministic parameter init, identical to the PyTorch __init__.
    return 1.0 / jnp.power(
        10000.0, jnp.arange(0, dim, 2, dtype=jnp.float32) / dim)


if __name__ == "__main__":
    key = jax.random.PRNGKey(0)
    k1, k2, k3 = jax.random.split(key, 3)

    # Case 1: dim=32 (fold=8, W=256), n=8.
    dim = 32
    n = 8
    div_term = _make_div_term(dim)
    tta = jax.random.uniform(k1, (n,), jnp.float32, minval=0.0, maxval=50.0)
    out = jax.block_until_ready(time_to_arrival(tta, div_term, force_pallas=True))
    ref = time_to_arrival_reference(tta, div_term)
    assert out.shape == (n, dim) and out.dtype == jnp.float32
    assert jnp.allclose(out, ref, atol=2e-4, rtol=1e-5), \
        float(jnp.max(jnp.abs(out - ref)))

    # Case 2: N not a multiple of the lane fold (exercises row padding).
    n2 = 13
    tta2 = jax.random.uniform(k2, (n2,), jnp.float32, minval=0.0, maxval=50.0)
    out2 = jax.block_until_ready(
        time_to_arrival(tta2, div_term, force_pallas=True))
    ref2 = time_to_arrival_reference(tta2, div_term)
    assert out2.shape == (n2, dim) and out2.dtype == jnp.float32
    assert jnp.allclose(out2, ref2, atol=2e-4, rtol=1e-5)

    # Case 3: small dim=8 (fold=16, W=128) to exercise a deeper fold / K.
    dim3 = 8
    n3 = 40
    div3 = _make_div_term(dim3)
    tta3 = jax.random.uniform(k3, (n3,), jnp.float32, minval=0.0, maxval=50.0)
    out3 = jax.block_until_ready(
        time_to_arrival(tta3, div3, force_pallas=True))
    ref3 = time_to_arrival_reference(tta3, div3)
    assert out3.shape == (n3, dim3) and out3.dtype == jnp.float32
    assert jnp.allclose(out3, ref3, atol=2e-4, rtol=1e-5)

    print("KERNEL_OK")
</pallas_src>

<mosaic_0001>
module attributes {stable_mosaic.version = 11 : i64} {
  func.func @_tta_kernel(%arg0: i32, %arg1: memref<8x8xf32, #tpu.memory_space<vmem>>, %arg2: memref<8x256xf32, #tpu.memory_space<vmem>>, %arg3: memref<1x256xf32, #tpu.memory_space<vmem>>, %arg4: memref<8x256xf32, #tpu.memory_space<vmem>>) attributes {dimension_semantics = [#tpu.dimension_semantics<parallel>], iteration_bounds = array<i64: 1>, scalar_prefetch = 0 : i64, scratch_operands = 0 : i64, tpu.core_type = #tpu.core_type<tc>, window_params = [{transform_indices = @transform_0, window_bounds = array<i64: 8, 8>}, {pipeline_mode = #tpu.pipeline_mode<synchronous>, transform_indices = @transform_1, window_bounds = array<i64: 8, 256>}, {pipeline_mode = #tpu.pipeline_mode<synchronous>, transform_indices = @transform_2, window_bounds = array<i64: 1, 256>}, {transform_indices = @transform_3, window_bounds = array<i64: 8, 256>}]} {
    %c0 = arith.constant 0 : index
    %c0_0 = arith.constant 0 : index
    %0 = vector.load %arg1[%c0, %c0_0] : memref<8x8xf32, #tpu.memory_space<vmem>>, vector<8x8xf32>
    %c0_1 = arith.constant 0 : index
    %c0_2 = arith.constant 0 : index
    %1 = vector.load %arg2[%c0_1, %c0_2] : memref<8x256xf32, #tpu.memory_space<vmem>>, vector<8x256xf32>
    %cst = arith.constant dense<0.000000e+00> : vector<8x256xf32>
    %2 = tpu.matmul %0, %1, %cst {dimension_numbers = #tpu.dot_dimension_numbers<[1], [0], [0], [1], [0, 0, 1, 1], [], []>, precision = #tpu.contract_precision<fp32>} : vector<8x8xf32>, vector<8x256xf32>, vector<8x256xf32> -> vector<8x256xf32>
    %c0_3 = arith.constant 0 : index
    %c0_4 = arith.constant 0 : index
    %3 = vector.load %arg3[%c0_3, %c0_4] : memref<1x256xf32, #tpu.memory_space<vmem>>, vector<1x256xf32>
    %4 = vector.broadcast %3 : vector<1x256xf32> to vector<8x256xf32>
    %5 = arith.addf %2, %4 : vector<8x256xf32>
    %6 = math.sin %5 : vector<8x256xf32>
    %c0_5 = arith.constant 0 : index
    %c0_6 = arith.constant 0 : index
    %7 = vector.load %arg4[%c0_5, %c0_6] : memref<8x256xf32, #tpu.memory_space<vmem>>, vector<8x256xf32>
    tpu.vector_store %arg4[%c0_5, %c0_6], %6 {strides = array<i32>} : memref<8x256xf32, #tpu.memory_space<vmem>>, vector<8x256xf32>,
    return
  }
  func.func @transform_0(%arg0: i32) -> (i32, i32) {
    %c0_i32 = arith.constant 0 : i32
    %c0_i32_0 = arith.constant 0 : i32
    return %arg0, %c0_i32 : i32, i32
  }
  func.func @transform_1(%arg0: i32) -> (i32, i32) {
    %c0_i32 = arith.constant 0 : i32
    %c0_i32_0 = arith.constant 0 : i32
    %c0_i32_1 = arith.constant 0 : i32
    return %c0_i32, %c0_i32_0 : i32, i32
  }
  func.func @transform_2(%arg0: i32) -> (i32, i32) {
    %c0_i32 = arith.constant 0 : i32
    %c0_i32_0 = arith.constant 0 : i32
    %c0_i32_1 = arith.constant 0 : i32
    return %c0_i32, %c0_i32_0 : i32, i32
  }
  func.func @transform_3(%arg0: i32) -> (i32, i32) {
    %c0_i32 = arith.constant 0 : i32
    %c0_i32_0 = arith.constant 0 : i32
    return %arg0, %c0_i32 : i32, i32
  }
}

</mosaic_0001>

<bundles_post_ra>
// kernel: tpu_custom_call.1
= control target key start
LH: loop header
LB: loop body
LE: loop exit
PB: predicated region body
PF: predicated region fallthrough
CT: control target
= control target key end

     0   :  { %8 = vsyncpa [#allocation3], 0  ;;  %s960_s0 = inlined_call_operand.hbm [shape: f32[8,8], index: 0, kind: input, shape index: {}]   ;;  %s961_s1 = inlined_call_operand.hbm [shape: f32[8,256], index: 1, kind: input, shape index: {}]   ;;  %s962_s2 = inlined_call_operand.vmem [shape: f32[1,256], index: 2, kind: input, shape index: {}]   ;;  %s963_s3 = inlined_call_operand.hbm [shape: f32[8,256], index: 3, kind: output, shape index: {}]  }
   0x1   :  { %9 = vsyncpa [#allocation6], 0 }
   0x2   :  { %10 = vsyncpa [#allocation4], 0  ;;  %s849_s12 = smov [#allocation2]   ;;  %s850_s14 = smov [#allocation5]  }
   0x3   :  { %s17_s13 = sshll.u32 %s849_s12, 4  ;;  %s27_s15 = sshll.u32 %s850_s14, 4  ;;  %s18_s13 = int_to_ptr.vmem [resolvable:$true] %s17_s13  ;;  %s28_s15 = int_to_ptr.vmem [resolvable:$true] %s27_s15 }
   0x4   :  { %s791_s16 = scalar_lea.vmem %s18_s13, 128  ;;  %p796_p1 = scmp.lt.s32.totalorder %s18_s13, %s18_s13 }
   0x5   :  { %p792_p0 = scmp.ne.s32.totalorder %s18_s13, %s791_s16  ;;  %p797_p2 = scmp.lt.s32.totalorder %s791_s16, %s791_s16 }
   0x7   :  { %p798_p3 = por %p797_p2, %p796_p1 }
   0x9   :  { %p799_p4 = pnand %p798_p3, %p792_p0 }
   0xb   :  { %802 = shalt.err (!%p799_p4)
}
   0xc   :  { %20 = dma.hbm_to_vmem [thread:$0]  %s960_s0, 128, %s18_s13, [#allocation3]  }
   0xd   :  { %s811_s19 = scalar_lea.vmem %s28_s15, 256  ;;  %p816_p6 = scmp.lt.s32.totalorder %s28_s15, %s28_s15 }
   0xe   :  { %p812_p5 = scmp.ne.s32.totalorder %s28_s15, %s811_s19  ;;  %p817_p7 = scmp.lt.s32.totalorder %s811_s19, %s811_s19 }
  0x10   :  { %p818_p8 = por %p817_p7, %p816_p6 }
  0x12   :  { %p819_p9 = pnand %p818_p8, %p812_p5 }
  0x14   :  { %822 = shalt.err (!%p819_p9)
}
  0x15   :  { %30 = dma.hbm_to_vmem [thread:$0]  %s961_s1, 256, %s28_s15, [#allocation6]  }
  0x16   :  { %843 = dma.done.wait [#allocation3], 128  }
  0x17   :  { %844 = vsyncadd [#allocation3], 4294967168 }
  0x18   :  { %845 = dma.done.wait [#allocation6], 256  }
  0x19   :  { %846 = vsyncadd [#allocation6], 4294967040  ;;  %v851_v0 = vmov 0.0   ;;  %vm54_vm0 = vcmask 64512   ;;  %v41_v1 = vld [vmem:[#allocation5 + $0x8] sm:$0xff]  ;;  %v40_v2 = vld [vmem:[#allocation5] sm:$0xff]  ;;  %v44_v20 = vlaneseq }
  0x1a   :  { %124 = vmatprep.mubr.f32.mxu0 %v851_v0  ;;  %210 = vmatprep.mubr.f32.mxu1 %v851_v0  ;;  %v39_v3 = vld [vmem:[#allocation2] sm:$0xff]  ;;  %v88_v4 = vand.u32 4294901760, %v41_v1  ;;  %v90_v5 = vand.u32 4294901760, %v40_v2 }
  0x1b   :  { %v56_v6 = vsel %vm54_vm0, %v39_v3, 0  ;;  %v45_v21 = vshrl.u32 %v44_v20, 7  ;;  %v42_v23 = vld [vmem:[%s962_s2] sm:$0x3]  ;;  %s858_s2 = smov [#allocation7]  }
  0x1c   :  { %v125_v7 = vand.u32 4294901760, %v56_v6  ;;  %89 = vmatprep.subr.mxu0 %v88_v4  ;;  %v167_v8 = vsub.f32 %v41_v1, %v88_v4  ;;  %v173_v9 = vsub.f32 %v40_v2, %v90_v5  ;;  %s739_s22 = sshll.u32 %s858_s2, 4  ;;  %s740_s22 = int_to_ptr.vmem [resolvable:$true] %s739_s22 }
  0x1d   :  { %91 = vmatpush1.msra.mxu0 %v90_v5  ;;  %v46_v22 = vsub.s32 0, %v45_v21  ;;  %v50_v24 = vsub.s32 1, %v45_v21  ;;  %v857_v21 = vmov 1326507024   ;;  %s823_s23 = scalar_lea.vmem %s740_s22, 256  ;;  %p828_p11 = scmp.lt.s32.totalorder %s740_s22, %s740_s22 }
  0x1e   :  { %v126_v10 = vsub.f32 %v56_v6, %v125_v7  ;;  %v168_v11 = vand.u32 4294901760, %v167_v8  ;;  %250 = vmatprep.subr.mxu0 %v167_v8  ;;  %v174_v12 = vand.u32 4294901760, %v173_v9  ;;  %p824_p10 = scmp.ne.s32.totalorder %s740_s22, %s823_s23  ;;  %p829_p12 = scmp.lt.s32.totalorder %s823_s23, %s823_s23 }
  0x1f   :  { %v47_v25 = vrot.slane %v42_v23, %v46_v22  ;;  %v51_v26 = vrot.slane %v42_v23, %v50_v24 }
  0x20   :  { %v127_v13 = vand.u32 4294901760, %v126_v10  ;;  %v169_v14 = vsub.f32 %v167_v8, %v168_v11  ;;  %v175_v15 = vsub.f32 %v173_v9, %v174_v12  ;;  %v853_v8 = vmov 2475754826   ;;  %p830_p13 = por %p829_p12, %p828_p11 }
  0x22   :  { %v128_v16 = vsub.f32 %v126_v10, %v127_v13  ;;  %v170_v17 = vand.u32 4294901760, %v169_v14  ;;  %v176_v18 = vand.u32 4294901760, %v175_v15  ;;  %v856_v14 = vmov 920167782   ;;  %p831_p0 = pnand %p830_p13, %p824_p10 }
  0x24   :  { %v129_v19 = vand.u32 4294901760, %v128_v16  ;;  %171 = vmatprep.subr.mxu1 %v170_v17 }
  0x25   :  { %177 = vmatpush1.msra.mxu1 %v176_v18 }
  0x26   :  { %130 = vmatmul.mubr.f32.vlgmr.msra.gmra.mxu0 %v129_v19  ;;  %212 = vmatmul.mubr.f32.vlgmr.msra.gmra.mxu1 %v125_v7 }
  0x27   :  { %253 = vmatpush1.msra.mxu0 %v173_v9  ;;  %326 = vmatprep.subr.mxu1 %v88_v4 }
  0x28   :  { %286 = vmatprep.mubr.f32.mxu0 %v851_v0  ;;  %328 = vmatpush1.msra.mxu1 %v90_v5 }
  0x29   :  { %404 = vmatprep.subr.mxu0 %v168_v11  ;;  %361 = vmatprep.mubr.f32.mxu1 %v851_v0 }
  0x2a   :  { %289 = vmatmul.mubr.f32.vlgmr.msra.gmra.mxu0 %v126_v10  ;;  %365 = vmatmul.mubr.f32.vlgmr.msra.gmra.mxu1 %v127_v13  ;;  %v854_v10 = vmov 2131351028  }
  0x2b   :  { %408 = vmatpush1.msra.mxu0 %v174_v12  ;;  %480 = vmatprep.subr.mxu1 %v88_v4  ;;  %v855_v12 = vmov 2102212464  }
  0x2c   :  { %441 = vmatprep.mubr.f32.mxu0 %v851_v0  ;;  %482 = vmatpush1.msra.mxu1 %v90_v5  ;;  %v852_v5 = vmov 683565275  }
  0x2d   :  { %515 = vmatprep.mubr.f32.mxu1 %v851_v0 }
  0x2e   :  { %443 = vmatmul.mubr.f32.vlgmr.msra.gmra.mxu0 %v125_v7  ;;  %517 = vmatmul.mubr.f32.vlgmr.msra.gmra.mxu1 %v125_v7 }
  0xe6   :  { %v131_v27 = vpop.f32.mrf.mxu0  ;;  %v213_v29 = vpop.f32.mrf.mxu1 }
  0xe7   :  { %v132_v28 = vadd.f32 %v131_v27, %v47_v25 }
  0xe8   :  { %v133_v30 = vpop.f32.mrf.mxu0  ;;  %v215_v33 = vpop.f32.mrf.mxu1 }
  0xe9   :  { %v214_v31 = vadd.f32 %v213_v29, %v132_v28  ;;  %v134_v32 = vadd.f32 %v133_v30, %v51_v26 }
  0xea   :  { %v290_v34 = vpop.f32.mrf.mxu0  ;;  %v366_v37 = vpop.f32.mrf.mxu1 }
  0xeb   :  { %v216_v35 = vadd.f32 %v215_v33, %v134_v32  ;;  %v291_v36 = vadd.f32 %v290_v34, %v214_v31 }
  0xec   :  { %v292_v38 = vpop.f32.mrf.mxu0  ;;  %v368_v41 = vpop.f32.mrf.mxu1 }
  0xed   :  { %v367_v39 = vadd.f32 %v366_v37, %v291_v36  ;;  %v293_v40 = vadd.f32 %v292_v38, %v216_v35 }
  0xee   :  { %v444_v42 = vpop.f32.mrf.mxu0  ;;  %v518_v45 = vpop.f32.mrf.mxu1 }
  0xef   :  { %v369_v43 = vadd.f32 %v368_v41, %v293_v40  ;;  %v445_v44 = vadd.f32 %v444_v42, %v367_v39 }
  0xf0   :  { %v446_v46 = vpop.f32.mrf.mxu0  ;;  %v520_v49 = vpop.f32.mrf.mxu1 }
  0xf1   :  { %v888_v47 = vadd.f32 %v518_v45, %v445_v44  ;;  %v447_v48 = vadd.f32 %v446_v46, %v369_v43 }
  0xf3   :  { %v523_v50 = vand.u32 2147483647, %v888_v47  ;;  %v526_v51 = vand.u32 2139095040, %v888_v47  ;;  %v892_v52 = vadd.f32 %v520_v49, %v447_v48  ;;  %vm525_vm15 = vcmp.lt.s32.totalorder %v888_v47, 0 }
  0xf5   :  { %v527_v53 = vshrl.u32 %v526_v51, 23  ;;  %v530_v54 = vand.u32 8388607, %v523_v50  ;;  %v630_v55 = vand.u32 2139095040, %v892_v52  ;;  %v627_v57 = vand.u32 2147483647, %v892_v52 }
  0xf6   :  { %vm524_vm0 = vcmp.le.f32.partialorder %v523_v50, 0.7853982 }
  0xf7   :  { %v749_v56 = vadd.s32 4294967169, %v527_v53  ;;  %v631_v58 = vshrl.u32 %v630_v55, 23  ;;  %v531_v60 = vor.u32 8388608, %v530_v54  ;;  %v634_v62 = vand.u32 8388607, %v627_v57 }
  0xf9   :  { %v533_v59 = vadd.s32 1, %v749_v56  ;;  %v753_v61 = vadd.s32 4294967169, %v631_v58  ;;  %v900_v3 = vshll.u32 %v531_v60, 8  ;;  %v635_v7 = vor.u32 8388608, %v634_v62 }
  0xfb   :  { %vm534_vm1 = vcmp.gt.s32.totalorder %v533_v59, 0  ;;  %v637_v0 = vadd.s32 1, %v753_v61  ;;  %v675_v40 = vshll.u32 %v635_v7, 8 }
  0xfc   :  { %v535_v63 = vsel %vm534_vm1, %v533_v59, 0  ;;  %vm629_vm1 = vcmp.lt.s32.totalorder %v892_v52, 0 }
  0xfd   :  { %v536_v1 = vshrl.u32 %v535_v63, 5  ;;  %v537_v2 = vand.u32 31, %v535_v63  ;;  %vm638_vm2 = vcmp.gt.s32.totalorder %v637_v0, 0 }
  0xfe   :  { %v639_v26 = vsel %vm638_vm2, %v637_v0, 0  ;;  %vm946_vm2 = vcmp.le.f32.partialorder %v627_v57, 0.7853982 }
  0xff   :  { %v538_v4 = vsub.s32 32, %v537_v2  ;;  %v540_v6 = vshll.u32 %v852_v5, %v537_v2  ;;  %v543_v9 = vshll.u32 %v853_v8, %v537_v2  ;;  %v546_v11 = vshll.u32 %v854_v10, %v537_v2 }
 0x100   :  { %v549_v13 = vshll.u32 %v855_v12, %v537_v2  ;;  %v552_v15 = vshll.u32 %v856_v14, %v537_v2  ;;  %vm555_vm3 = vcmp.lt.s32.totalorder %v536_v1, 1  ;;  %vm557_vm4 = vcmp.lt.s32.totalorder %v536_v1, 3 }
 0x101   :  { %v541_v16 = vshrl.u32 %v853_v8, %v538_v4  ;;  %v544_v17 = vshrl.u32 %v854_v10, %v538_v4  ;;  %v547_v18 = vshrl.u32 %v855_v12, %v538_v4  ;;  %v539_v19 = vshrl.u32 %v852_v5, %v538_v4 }
 0x102   :  { %v550_v20 = vshrl.u32 %v856_v14, %v538_v4  ;;  %v553_v22 = vshrl.u32 %v857_v21, %v538_v4  ;;  %vm558_vm5 = vcmp.lt.s32.totalorder %v536_v1, 4  ;;  %v641_v29 = vand.u32 31, %v639_v26 }
 0x103   :  { %v542_v23 = vor.u32 %v541_v16, %v540_v6  ;;  %v545_v24 = vor.u32 %v544_v17, %v543_v9  ;;  %v548_v25 = vor.u32 %v547_v18, %v546_v11  ;;  %vm556_vm6 = vcmp.lt.s32.totalorder %v536_v1, 2 }
 0x104   :  { %v551_v27 = vor.u32 %v550_v20, %v549_v13  ;;  %v554_v28 = vor.u32 %v553_v22, %v552_v15  ;;  %v642_v37 = vsub.s32 32, %v641_v29  ;;  %v640_v44 = vshrl.u32 %v639_v26, 5 }
 0x105   :  { %v559_v30 = vsel %vm555_vm3, %v539_v19, %v542_v23  ;;  %v560_v31 = vsel %vm558_vm5, %v548_v25, 2102212464  ;;  %v563_v32 = vsel %vm555_vm3, %v542_v23, %v545_v24  ;;  %v567_v33 = vsel %vm555_vm3, %v545_v24, %v548_v25 }
 0x106   :  { %v561_v34 = vsel %vm557_vm4, %v545_v24, %v560_v31  ;;  %v564_v35 = vsel %vm558_vm5, %v551_v27, 920167782  ;;  %v568_v36 = vsel %vm558_vm5, %v554_v28, 1326507024  ;;  %v644_v51 = vshll.u32 %v852_v5, %v641_v29 }
 0x107   :  { %v565_v38 = vsel %vm557_vm4, %v548_v25, %v564_v35  ;;  %v569_v39 = vsel %vm557_vm4, %v551_v27, %v568_v36  ;;  %v562_v41 = vsel %vm556_vm6, %v559_v30, %v561_v34  ;;  %v645_v53 = vshrl.u32 %v853_v8, %v642_v37 }
 0x108   :  { %v566_v42 = vsel %vm556_vm6, %v563_v32, %v565_v38  ;;  %v570_v43 = vsel %vm556_vm6, %v567_v33, %v569_v39  ;;  %v647_v54 = vshll.u32 %v853_v8, %v641_v29  ;;  %v648_v55 = vshrl.u32 %v854_v10, %v642_v37 }
 0x109   :  { %v912_v45 = vmul.u32.u64.low %v900_v3, %v570_v43  ;;  %v913_v46 = vmul.u32.u64.high %v900_v3, %v570_v43, %v912_v45  ;;  %v916_v48 = vmul.u32.u64.low %v900_v3, %v566_v42  ;;  %v917_v49 = vmul.u32.u64.high %v900_v3, %v566_v42, %v916_v48 }
 0x10a   :  { %v650_v56 = vshll.u32 %v854_v10, %v641_v29  ;;  %v651_v58 = vshrl.u32 %v855_v12, %v642_v37  ;;  %v653_v59 = vshll.u32 %v855_v12, %v641_v29  ;;  %v654_v60 = vshrl.u32 %v856_v14, %v642_v37 }
 0x10b   :  { %v646_v61 = vor.u32 %v645_v53, %v644_v51  ;;  %v649_v62 = vor.u32 %v648_v55, %v647_v54  ;;  %v656_v63 = vshll.u32 %v856_v14, %v641_v29  ;;  %v657_v0 = vshrl.u32 %v857_v21, %v642_v37 }
 0x10c   :  { %v578_v1 = vmul.u32 %v900_v3, %v562_v41  ;;  %vm580_vm7 = vc.u32 %v913_v46, %v916_v48  ;;  %v581_v2 = vadd.s32 1, %v917_v49  ;;  %v652_v4 = vor.u32 %v651_v58, %v650_v56 }
 0x10d   :  { %v643_v6 = vshrl.u32 %v852_v5, %v642_v37  ;;  %v655_v7 = vor.u32 %v654_v60, %v653_v59  ;;  %v658_v8 = vor.u32 %v657_v0, %v656_v63  ;;  %vm659_vm8 = vcmp.lt.s32.totalorder %v640_v44, 1 }
 0x10e   :  { %v582_v9 = vsel %vm580_vm7, %v581_v2, %v917_v49  ;;  %vm661_vm9 = vcmp.lt.s32.totalorder %v640_v44, 3  ;;  %vm662_vm10 = vcmp.lt.s32.totalorder %v640_v44, 4  ;;  %v667_v10 = vsel %vm659_vm8, %v646_v61, %v649_v62 }
 0x10f   :  { %v583_v11 = vadd.s32 %v582_v9, %v578_v1  ;;  %v664_v12 = vsel %vm662_vm10, %v652_v4, 2102212464  ;;  %v668_v13 = vsel %vm662_vm10, %v655_v7, 920167782  ;;  %v671_v3 = vsel %vm659_vm8, %v649_v62, %v652_v4 }
 0x110   :  { %vm660_vm11 = vcmp.lt.s32.totalorder %v640_v44, 2  ;;  %v663_v14 = vsel %vm659_vm8, %v643_v6, %v646_v61  ;;  %v669_v15 = vsel %vm661_vm9, %v652_v4, %v668_v13  ;;  %v672_v16 = vsel %vm662_vm10, %v658_v8, 1326507024 }
 0x111   :  { %v584_v17 = vadd.s32 536870912, %v583_v11  ;;  %v665_v18 = vsel %vm661_vm9, %v649_v62, %v664_v12  ;;  %v670_v19 = vsel %vm660_vm11, %v667_v10, %v669_v15  ;;  %v673_v5 = vsel %vm661_vm9, %v655_v7, %v672_v16 }
 0x112   :  { %v674_v20 = vsel %vm660_vm11, %v671_v3, %v673_v5  ;;  %v927_v21 = vmul.u32.u64.low %v675_v40, %v670_v19  ;;  %v928_v22 = vmul.u32.u64.high %v675_v40, %v670_v19, %v927_v21  ;;  %v666_v26 = vsel %vm660_vm11, %v663_v14, %v665_v18 }
 0x113   :  { %v585_v23 = vshrl.u32 %v584_v17, 30  ;;  %v930_v24 = vmul.u32.u64.low %v675_v40, %v674_v20  ;;  %v931_v25 = vmul.u32.u64.high %v675_v40, %v674_v20, %v930_v24  ;;  %v682_v30 = vmul.u32 %v675_v40, %v666_v26 }
 0x114   :  { %v685_v28 = vadd.s32 1, %v928_v22  ;;  %v579_v43 = vadd.s32 %v916_v48, %v913_v46  ;;  %vm615_vm6 = vweird.f32 %v888_v47  ;;  %vm719_vm10 = vweird.f32 %v892_v52 }
 0x115   :  { %v586_v27 = vshll.u32 %v585_v23, 30  ;;  %vm684_vm12 = vc.u32 %v931_v25, %v927_v21  ;;  %v683_v1 = vadd.s32 %v927_v21, %v931_v25  ;;  %v609_v8 = vsub.s32 4, %v585_v23 }
 0x116   :  { %v686_v31 = vsel %vm684_vm12, %v685_v28, %v928_v22 }
 0x117   :  { %v587_v29 = vsub.s32 %v583_v11, %v586_v27  ;;  %v687_v33 = vadd.s32 %v686_v31, %v682_v30  ;;  %v610_v3 = vsel %vm525_vm15, %v609_v8, %v585_v23 }
 0x118   :  { %v612_v17 = vsel %vm524_vm0, 0, %v610_v3 }
 0x119   :  { %v589_v32 = vsub.s32 0, %v587_v29  ;;  %v688_v35 = vadd.s32 536870912, %v687_v33  ;;  %v616_v19 = vadd.s32 3, %v612_v17 }
 0x11b   :  { %v750_v34 = vmin.u32 %v589_v32, %v587_v29  ;;  %v689_v37 = vshrl.u32 %v688_v35, 30  ;;  %v617_v22 = vand.u32 3, %v616_v19 }
 0x11d   :  { %v591_v36 = vclz %v750_v34  ;;  %v690_v39 = vshll.u32 %v689_v37, 30  ;;  %v713_v5 = vsub.s32 4, %v689_v37  ;;  %vm622_vm3 = vcmp.eq.s32.totalorder %v617_v22, 2 }
 0x11e   :  { %vm619_vm4 = vcmp.eq.s32.totalorder %v617_v22, 0  ;;  %vm618_vm5 = vcmp.lt.s32.totalorder %v617_v22, 2 }
 0x11f   :  { %v751_v38 = vadd.s32 4294967294, %v591_v36  ;;  %v691_v41 = vsub.s32 %v687_v33, %v690_v39  ;;  %v714_v23 = vsel %vm629_vm1, %v713_v5, %v689_v37 }
 0x120   :  { %v716_v27 = vsel %vm946_vm2, 0, %v714_v23 }
 0x121   :  { %vm752_vm13 = vcmp.lt.s32.totalorder %v751_v38, 0  ;;  %v693_v45 = vsub.s32 0, %v691_v41  ;;  %v720_v30 = vadd.s32 3, %v716_v27 }
 0x122   :  { %v594_v42 = vsel %vm752_vm13, 0, %v751_v38 }
 0x123   :  { %v595_v44 = vsub.s32 32, %v594_v42  ;;  %v599_v40 = vsub.s32 4294967266, %v594_v42  ;;  %v596_v49 = vshll.u32 %v587_v29, %v594_v42  ;;  %v754_v54 = vmin.u32 %v693_v45, %v691_v41 }
 0x124   :  { %v721_v33 = vand.u32 3, %v720_v30 }
 0x125   :  { %v597_v51 = vshrl.u32 %v579_v43, %v595_v44  ;;  %v600_v53 = vadd.s32 127, %v599_v40  ;;  %v695_v58 = vclz %v754_v54 }
 0x126   :  { %vm726_vm7 = vcmp.eq.s32.totalorder %v721_v33, 2  ;;  %vm723_vm8 = vcmp.eq.s32.totalorder %v721_v33, 0  ;;  %vm722_vm9 = vcmp.lt.s32.totalorder %v721_v33, 2 }
 0x127   :  { %v598_v55 = vor.u32 %v597_v51, %v596_v49  ;;  %v601_v56 = vshll.u32 %v600_v53, 23  ;;  %v755_v60 = vadd.s32 4294967294, %v695_v58 }
 0x129   :  { %v602_v59 = vor.u32 4788187, %v601_v56  ;;  %v605_v62 = vcvt.s32.f32 %v598_v55  ;;  %vm756_vm14 = vcmp.lt.s32.totalorder %v755_v60, 0 }
 0x12a   :  { %v698_v63 = vsel %vm756_vm14, 0, %v755_v60 }
 0x12b   :  { %v603_v61 = vand.u32 2147483647, %v602_v59  ;;  %v699_v46 = vsub.s32 32, %v698_v63  ;;  %v703_v48 = vsub.s32 4294967266, %v698_v63  ;;  %v700_v4 = vshll.u32 %v691_v41, %v698_v63 }
 0x12d   :  { %v606_v0 = vmul.f32 %v605_v62, %v603_v61  ;;  %v701_v6 = vshrl.u32 %v683_v1, %v699_v46  ;;  %v704_v7 = vadd.s32 127, %v703_v48 }
 0x12f   :  { %v607_v2 = vxor.u32 2147483648, %v606_v0  ;;  %v702_v10 = vor.u32 %v701_v6, %v700_v4  ;;  %v705_v11 = vshll.u32 %v704_v7, 23 }
 0x131   :  { %v608_v9 = vsel %vm525_vm15, %v607_v2, %v606_v0  ;;  %v706_v13 = vor.u32 4788187, %v705_v11  ;;  %v709_v15 = vcvt.s32.f32 %v702_v10 }
 0x132   :  { %v611_v12 = vsel %vm524_vm0, %v888_v47, %v608_v9 }
 0x133   :  { %775 = vcosq.f32 %v611_v12  ;;  %v707_v14 = vand.u32 2147483647, %v706_v13 }
 0x134   :  { %777 = vsinq.f32 %v611_v12 }
 0x135   :  { %v710_v16 = vmul.f32 %v709_v15, %v707_v14 }
 0x137   :  { %v711_v18 = vxor.u32 2147483648, %v710_v16 }
 0x139   :  { %v712_v20 = vsel %vm629_vm1, %v711_v18, %v710_v16 }
 0x13a   :  { %v715_v21 = vsel %vm946_vm2, %v892_v52, %v712_v20 }
 0x13b   :  { %779 = vcosq.f32 %v715_v21 }
 0x13c   :  { %781 = vsinq.f32 %v715_v21 }
 0x140   :  { %v776_v24 = vpop.eup %775 }
 0x141   :  { %v778_v25 = vpop.eup %777  ;;  %v623_v26 = vxor.u32 2147483648, %v776_v24 }
 0x142   :  { %v620_v28 = vxor.u32 2147483648, %v778_v25 }
 0x143   :  { %v624_v57 = vsel %vm622_vm3, %v623_v26, %v778_v25 }
 0x144   :  { %v621_v29 = vsel %vm619_vm4, %v776_v24, %v620_v28 }
 0x145   :  { %v625_v31 = vsel %vm618_vm5, %v621_v29, %v624_v57 }
 0x146   :  { %v626_v32 = vsel %vm615_vm6, nan, %v625_v31 }
 0x147   :  { %731 = vst [vmem:[#allocation7] sm:$0xff] %v626_v32 }
 0x148   :  { %v780_v34 = vpop.eup %779 }
 0x149   :  { %v782_v35 = vpop.eup %781  ;;  %v727_v36 = vxor.u32 2147483648, %v780_v34 }
 0x14a   :  { %v724_v37 = vxor.u32 2147483648, %v782_v35 }
 0x14b   :  { %v728_v38 = vsel %vm726_vm7, %v727_v36, %v782_v35 }
 0x14c   :  { %v725_v39 = vsel %vm723_vm8, %v780_v34, %v724_v37 }
 0x14d   :  { %v729_v41 = vsel %vm722_vm9, %v725_v39, %v728_v38 }
 0x14e   :  { %v730_v47 = vsel %vm719_vm10, nan, %v729_v41 }
 0x14f   :  { %732 = vst [vmem:[#allocation7 + $0x8] sm:$0xff] %v730_v47 }
 0x150   :  { %834 = shalt.err (!%p831_p0)
}
 0x151   :  { %742 = dma.vmem_to_hbm [thread:$0]  %s740_s22, 256, %s963_s3, [#allocation4]  }
 0x152   :  { %847 = dma.done.wait [#allocation4], 256  }
 0x153   :  { %848 = vsyncadd [#allocation4], 4294967040 }
 0x154   :  { %746 = vsyncpa [#allocation3], 1 }
 0x155   :  { %747 = vsyncpa [#allocation6], 1 }
 0x156   :  { %748 = vsyncpa [#allocation4], 1 }

</bundles_post_ra>
